<compile_context>
chip_gen: v5e
topology: v5e:2x2
jax: 0.10.0
libtpu: 0.0.40
codegen_flags: <defaults>
</compile_context>

<pallas_src>
import functools

import jax
import jax.numpy as jnp
from jax.experimental import pallas as pl
from jax.experimental.pallas import tpu as pltpu


_LANE = 128


def _round_up(x, m):
    return (x + m - 1) // m * m


def _pad_axis(x, mult, axis):
    pad = (-x.shape[axis]) % mult
    if pad == 0:
        return x
    widths = [(0, 0)] * x.ndim
    widths[axis] = (0, pad)
    return jnp.pad(x, widths)


def ensemble_kernel(g_ref, h_ref, w1_ref, b1_ref, w2_ref, b2_ref, o_ref, *, inv_m):
    """One row tile of: (1/M) * [relu(g @ h @ W1cat + b1cat) @ W2cat] + mean(b2)."""
    # Shared g @ h — computed once per row tile (invariant across the ensemble).
    # f32 MXU accumulation; cast to bf16 only as it feeds the next matmul.
    gh = jnp.dot(g_ref[...], h_ref[...],
                 preferred_element_type=jnp.float32).astype(w1_ref.dtype)
    # All M hidden layers fused into a single lane-dense matmul (cols = M*Hp).
    z = jnp.dot(gh, w1_ref[...], preferred_element_type=jnp.float32) + b1_ref[...]
    # Fuse relu with the bf16 down-cast (halves spill traffic of the (tm, M*Hp)
    # intermediate).
    z = jnp.maximum(z, 0.0).astype(w2_ref.dtype)
    # All M output layers fused along the contraction axis; block-sum over M*Hp
    # is the ensemble sum -> scale by 1/M in f32, add mean_m(b2).
    out = jnp.dot(z, w2_ref[...], preferred_element_type=jnp.float32) * inv_m
    out = out + b2_ref[...]
    o_ref[...] = out.astype(o_ref.dtype)


def ensemble_forward(g, h, e, w1, b1, w2, b2, *, compute_dtype=jnp.bfloat16):
    """Mean over M sub-model forwards, fused into one Pallas TPU kernel call."""
    del e  # TODO(synk): edge features unused by the synthetic sub-models.
    M, D, H = w1.shape
    _, _, O = w2.shape
    N = g.shape[0]

    # ---- Fold the M-model ensemble into two matmuls (wrapper-side plumbing) --
    # w1cat[D, M*H] : column block m = W1[m]
    # w2cat[M*H, O] : row block m = W2[m]   (block-sum == ensemble sum; the 1/M
    #                 mean is applied in f32 inside the kernel)
    w1cat = jnp.transpose(w1, (1, 0, 2)).reshape(D, M * H)
    b1cat = b1.reshape(1, M * H)
    w2cat = w2.reshape(M * H, O)
    b2mean = jnp.mean(b2, axis=0).reshape(1, O)

    # ---- Zero-pad feature dims to lane width (exact numerical no-op) --------
    w1_p = _pad_axis(_pad_axis(w1cat, _LANE, 0), _LANE, 1)
    b1_p = _pad_axis(b1cat, _LANE, 1)
    w2_p = _pad_axis(_pad_axis(w2cat, _LANE, 0), _LANE, 1)
    b2_p = _pad_axis(b2mean, _LANE, 1)
    Dp, MHp = w1_p.shape
    Op = w2_p.shape[1]

    # ---- Pad the contraction axis N to lane / MXU-K width --------------------
    # 256 matches the v6e/v7x 2x256^2 MXU K dim once N exceeds 128; zero cols of
    # g times zero rows of h contribute nothing (exact no-op).
    Np = _round_up(N, 256 if N > 128 else _LANE)

    # ---- Row-tile selection ---------------------------------------------------
    # Multiple of 16 (bf16 sublane packing) even for tiny N; for large N go up
    # to 512 (amortizes per-step overhead / weight load), while keeping >= 2 row
    # tiles past N=256 so both v7x TensorCores get work on the "parallel" axis.
    if N <= 256:
        tm = _round_up(max(N, 8), 16)
    else:
        tm = min(512, _round_up(pl.cdiv(N, 2), 256))

    # Conservative VMEM budget (v7x has 64 MiB per TensorCore; leave headroom).
    VMEM_BUDGET = 48 * 1024 * 1024

    def _vmem_need(tile_m):
        g_tile = 2 * tile_m * Np * 2                       # bf16, double-buffered
        resident = (Np * Dp + Dp * MHp + MHp * Op) * 2 \
            + (MHp + Op) * 4                               # single-buffered h/W/b
        out_tile = 2 * tile_m * Op * 4                     # f32, double-buffered
        interm = tile_m * (Dp * 6 + MHp * 6 + Op * 4)      # gh/z/out intermediates
        return g_tile + resident + out_tile + interm

    while tm > 128 and _vmem_need(tm) > VMEM_BUDGET:
        tm = max(128, tm - 128)

    n_row_tiles = pl.cdiv(N, tm)
    Nr = n_row_tiles * tm

    # ---- Pad g / h and cast MXU operands to bf16 (f32 accumulation) ----------
    g_p = jnp.pad(g, ((0, Nr - N), (0, Np - N))) if (Nr != N or Np != N) else g
    h_p = _pad_axis(h, _LANE, 1)                           # cols -> Dp
    h_p = jnp.pad(h_p, ((0, Np - N), (0, 0))) if Np != N else h_p

    g_p = g_p.astype(compute_dtype)
    h_p = h_p.astype(compute_dtype)
    w1_p = w1_p.astype(compute_dtype)
    w2_p = w2_p.astype(compute_dtype)
    b1_p = b1_p.astype(jnp.float32)
    b2_p = b2_p.astype(jnp.float32)

    nbytes = lambda a: int(a.size) * a.dtype.itemsize
    cost = pl.CostEstimate(
        flops=2 * (Nr * Np * Dp + Nr * Dp * MHp + Nr * MHp * Op),
        transcendentals=0,
        bytes_accessed=(nbytes(g_p) + nbytes(h_p) + nbytes(w1_p) + nbytes(b1_p)
                        + nbytes(w2_p) + nbytes(b2_p) + Nr * Op * 4),
    )

    # Explicit scoped-VMEM limit (defaults: 16 MiB v5e / 32 MiB v6e,v7x) so the
    # resident h + intermediates never force spills or compile failure.
    vmem_limit = int(min(max(2 * _vmem_need(tm) + (4 << 20), 32 << 20), 64 << 20))

    kernel = functools.partial(ensemble_kernel, inv_m=float(1.0 / M))
    resident = dict(pipeline_mode=pl.Buffered(1))          # grid-invariant inputs

    out_full = pl.pallas_call(
        kernel,
        out_shape=jax.ShapeDtypeStruct((Nr, Op), jnp.float32),
        grid_spec=pltpu.PrefetchScalarGridSpec(
            num_scalar_prefetch=0,
            grid=(n_row_tiles,),
            in_specs=[
                pl.BlockSpec((tm, Np), lambda i: (i, 0)),                 # g rows
                pl.BlockSpec((Np, Dp), lambda i: (0, 0), **resident),     # h
                pl.BlockSpec((Dp, MHp), lambda i: (0, 0), **resident),    # W1cat
                pl.BlockSpec((1, MHp), lambda i: (0, 0), **resident),     # b1cat
                pl.BlockSpec((MHp, Op), lambda i: (0, 0), **resident),    # W2cat
                pl.BlockSpec((1, Op), lambda i: (0, 0), **resident),      # mean b2
            ],
            out_specs=pl.BlockSpec((tm, Op), lambda i: (i, 0)),
        ),
        compiler_params=pltpu.CompilerParams(
            dimension_semantics=("parallel",),
            vmem_limit_bytes=vmem_limit,
        ),
        cost_estimate=cost,
    )(g_p, h_p, w1_p, b1_p, w2_p, b2_p)

    return out_full[:N, :O]


def ensemble_reference(g, h, e, w1, b1, w2, b2):
    """Pure-JAX f32 reference: stack per-model outputs, mean over model axis."""
    del e
    outs = []
    for m in range(w1.shape[0]):
        z = jnp.maximum(g @ h @ w1[m] + b1[m], 0.0)
        outs.append(z @ w2[m] + b2[m])
    return jnp.mean(jnp.stack(outs), axis=0)


if __name__ == "__main__":
    M = 3        # number of ensembled models
    N = 8        # number of graph nodes
    D = 32       # input feature dim
    H = 32       # hidden dim
    O = 32       # output dim
    E = 16       # number of edges (edge features unused)

    key = jax.random.PRNGKey(0)
    kg, kh, ke, kw1, kb1, kw2, kb2 = jax.random.split(key, 7)

    # Row-normalized dense adjacency (self-loops included).
    adj = (jax.random.uniform(kg, (N, N)) > 0.5).astype(jnp.float32)
    adj = adj + jnp.eye(N, dtype=jnp.float32)
    g = adj / jnp.sum(adj, axis=-1, keepdims=True)

    h = jax.random.normal(kh, (N, D), dtype=jnp.float32)
    e = jax.random.normal(ke, (E, D), dtype=jnp.float32)

    # Deterministic per-model parameters, stacked on a leading model axis.
    w1 = jax.random.normal(kw1, (M, D, H), dtype=jnp.float32) * 0.1
    b1 = jax.random.normal(kb1, (M, 1, H), dtype=jnp.float32) * 0.1
    w2 = jax.random.normal(kw2, (M, H, O), dtype=jnp.float32) * 0.1
    b2 = jax.random.normal(kb2, (M, 1, O), dtype=jnp.float32) * 0.1

    out = jax.block_until_ready(ensemble_forward(g, h, e, w1, b1, w2, b2))
    ref = ensemble_reference(g, h, e, w1, b1, w2, b2)

    assert out.shape == (N, O) and out.dtype == jnp.float32
    # bf16 MXU operands with f32 accumulation -> allow bf16-level tolerance.
    max_err = float(jnp.max(jnp.abs(out - ref)))
    assert jnp.allclose(out, ref, atol=3e-2, rtol=3e-2), f"max abs err {max_err}"
    print("KERNEL_OK")
</pallas_src>

<mosaic_0001>
module attributes {stable_mosaic.version = 11 : i64} {
  func.func @ensemble_kernel(%arg0: i32, %arg1: memref<16x128xbf16, #tpu.memory_space<vmem>>, %arg2: memref<128x128xbf16, #tpu.memory_space<vmem>>, %arg3: memref<128x128xbf16, #tpu.memory_space<vmem>>, %arg4: memref<1x128xf32, #tpu.memory_space<vmem>>, %arg5: memref<128x128xbf16, #tpu.memory_space<vmem>>, %arg6: memref<1x128xf32, #tpu.memory_space<vmem>>, %arg7: memref<16x128xf32, #tpu.memory_space<vmem>>) attributes {dimension_semantics = [#tpu.dimension_semantics<parallel>], iteration_bounds = array<i64: 1>, scalar_prefetch = 0 : i64, scratch_operands = 0 : i64, tpu.core_type = #tpu.core_type<tc>, window_params = [{transform_indices = @transform_0, window_bounds = array<i64: 16, 128>}, {pipeline_mode = #tpu.pipeline_mode<synchronous>, transform_indices = @transform_1, window_bounds = array<i64: 128, 128>}, {pipeline_mode = #tpu.pipeline_mode<synchronous>, transform_indices = @transform_2, window_bounds = array<i64: 128, 128>}, {pipeline_mode = #tpu.pipeline_mode<synchronous>, transform_indices = @transform_3, window_bounds = array<i64: 1, 128>}, {pipeline_mode = #tpu.pipeline_mode<synchronous>, transform_indices = @transform_4, window_bounds = array<i64: 128, 128>}, {pipeline_mode = #tpu.pipeline_mode<synchronous>, transform_indices = @transform_5, window_bounds = array<i64: 1, 128>}, {transform_indices = @transform_6, window_bounds = array<i64: 16, 128>}]} {
    %c0 = arith.constant 0 : index
    %c0_0 = arith.constant 0 : index
    %0 = vector.load %arg1[%c0, %c0_0] : memref<16x128xbf16, #tpu.memory_space<vmem>>, vector<16x128xbf16>
    %c0_1 = arith.constant 0 : index
    %c0_2 = arith.constant 0 : index
    %1 = vector.load %arg2[%c0_1, %c0_2] : memref<128x128xbf16, #tpu.memory_space<vmem>>, vector<128x128xbf16>
    %cst = arith.constant dense<0.000000e+00> : vector<16x128xf32>
    %2 = tpu.matmul %0, %1, %cst {dimension_numbers = #tpu.dot_dimension_numbers<[1], [0], [0], [1], [0, 0, 1, 1], [], []>} : vector<16x128xbf16>, vector<128x128xbf16>, vector<16x128xf32> -> vector<16x128xf32>
    %3 = arith.truncf %2 : vector<16x128xf32> to vector<16x128xbf16>
    %c0_3 = arith.constant 0 : index
    %c0_4 = arith.constant 0 : index
    %4 = vector.load %arg3[%c0_3, %c0_4] : memref<128x128xbf16, #tpu.memory_space<vmem>>, vector<128x128xbf16>
    %cst_5 = arith.constant dense<0.000000e+00> : vector<16x128xf32>
    %5 = tpu.matmul %3, %4, %cst_5 {dimension_numbers = #tpu.dot_dimension_numbers<[1], [0], [0], [1], [0, 0, 1, 1], [], []>} : vector<16x128xbf16>, vector<128x128xbf16>, vector<16x128xf32> -> vector<16x128xf32>
    %c0_6 = arith.constant 0 : index
    %c0_7 = arith.constant 0 : index
    %6 = vector.load %arg4[%c0_6, %c0_7] : memref<1x128xf32, #tpu.memory_space<vmem>>, vector<1x128xf32>
    %7 = vector.broadcast %6 : vector<1x128xf32> to vector<16x128xf32>
    %8 = arith.addf %5, %7 : vector<16x128xf32>
    %cst_8 = arith.constant 0.000000e+00 : f32
    %9 = vector.broadcast %cst_8 : f32 to vector<16x128xf32>
    %10 = arith.maximumf %8, %9 : vector<16x128xf32>
    %11 = arith.truncf %10 : vector<16x128xf32> to vector<16x128xbf16>
    %c0_9 = arith.constant 0 : index
    %c0_10 = arith.constant 0 : index
    %12 = vector.load %arg5[%c0_9, %c0_10] : memref<128x128xbf16, #tpu.memory_space<vmem>>, vector<128x128xbf16>
    %cst_11 = arith.constant dense<0.000000e+00> : vector<16x128xf32>
    %13 = tpu.matmul %11, %12, %cst_11 {dimension_numbers = #tpu.dot_dimension_numbers<[1], [0], [0], [1], [0, 0, 1, 1], [], []>} : vector<16x128xbf16>, vector<128x128xbf16>, vector<16x128xf32> -> vector<16x128xf32>
    %cst_12 = arith.constant 0.333333343 : f32
    %14 = vector.broadcast %cst_12 : f32 to vector<16x128xf32>
    %15 = arith.mulf %13, %14 : vector<16x128xf32>
    %c0_13 = arith.constant 0 : index
    %c0_14 = arith.constant 0 : index
    %16 = vector.load %arg6[%c0_13, %c0_14] : memref<1x128xf32, #tpu.memory_space<vmem>>, vector<1x128xf32>
    %17 = vector.broadcast %16 : vector<1x128xf32> to vector<16x128xf32>
    %18 = arith.addf %15, %17 : vector<16x128xf32>
    %c0_15 = arith.constant 0 : index
    %c0_16 = arith.constant 0 : index
    %19 = vector.load %arg7[%c0_15, %c0_16] : memref<16x128xf32, #tpu.memory_space<vmem>>, vector<16x128xf32>
    tpu.vector_store %arg7[%c0_15, %c0_16], %18 {strides = array<i32>} : memref<16x128xf32, #tpu.memory_space<vmem>>, vector<16x128xf32>,
    return
  }
  func.func @transform_0(%arg0: i32) -> (i32, i32) {
    %c0_i32 = arith.constant 0 : i32
    %c0_i32_0 = arith.constant 0 : i32
    return %arg0, %c0_i32 : i32, i32
  }
  func.func @transform_1(%arg0: i32) -> (i32, i32) {
    %c0_i32 = arith.constant 0 : i32
    %c0_i32_0 = arith.constant 0 : i32
    %c0_i32_1 = arith.constant 0 : i32
    return %c0_i32, %c0_i32_0 : i32, i32
  }
  func.func @transform_2(%arg0: i32) -> (i32, i32) {
    %c0_i32 = arith.constant 0 : i32
    %c0_i32_0 = arith.constant 0 : i32
    %c0_i32_1 = arith.constant 0 : i32
    return %c0_i32, %c0_i32_0 : i32, i32
  }
  func.func @transform_3(%arg0: i32) -> (i32, i32) {
    %c0_i32 = arith.constant 0 : i32
    %c0_i32_0 = arith.constant 0 : i32
    %c0_i32_1 = arith.constant 0 : i32
    return %c0_i32, %c0_i32_0 : i32, i32
  }
  func.func @transform_4(%arg0: i32) -> (i32, i32) {
    %c0_i32 = arith.constant 0 : i32
    %c0_i32_0 = arith.constant 0 : i32
    %c0_i32_1 = arith.constant 0 : i32
    return %c0_i32, %c0_i32_0 : i32, i32
  }
  func.func @transform_5(%arg0: i32) -> (i32, i32) {
    %c0_i32 = arith.constant 0 : i32
    %c0_i32_0 = arith.constant 0 : i32
    %c0_i32_1 = arith.constant 0 : i32
    return %c0_i32, %c0_i32_0 : i32, i32
  }
  func.func @transform_6(%arg0: i32) -> (i32, i32) {
    %c0_i32 = arith.constant 0 : i32
    %c0_i32_0 = arith.constant 0 : i32
    return %arg0, %c0_i32 : i32, i32
  }
}

</mosaic_0001>

<bundles_post_ra>
// kernel: tpu_custom_call.1
= control target key start
LH: loop header
LB: loop body
LE: loop exit
PB: predicated region body
PF: predicated region fallthrough
CT: control target
= control target key end

     0   :  { %11 = vsyncpa [#allocation3], 0  ;;  %s697_s0 = inlined_call_operand.hbm [shape: bf16[16,128], index: 0, kind: input, shape index: {}]   ;;  %s698_s1 = inlined_call_operand.hbm [shape: bf16[128,128], index: 1, kind: input, shape index: {}]   ;;  %s699_s2 = inlined_call_operand.hbm [shape: bf16[128,128], index: 2, kind: input, shape index: {}]   ;;  %s700_s3 = inlined_call_operand.vmem [shape: f32[1,128], index: 3, kind: input, shape index: {}]   ;;  %s701_s4 = inlined_call_operand.hbm [shape: bf16[128,128], index: 4, kind: input, shape index: {}]   ;;  %s702_s5 = inlined_call_operand.vmem [shape: f32[1,128], index: 5, kind: input, shape index: {}]   ;;  %s703_s6 = inlined_call_operand.hbm [shape: f32[16,128], index: 6, kind: output, shape index: {}]  }
   0x1   :  { %12 = vsyncpa [#allocation6], 0 }
   0x2   :  { %13 = vsyncpa [#allocation9], 0 }
   0x3   :  { %14 = vsyncpa [#allocation4], 0  ;;  %s32_s23 = sshll.u32 %s698_s1, 4  ;;  %s632_s24 = smov [#allocation5]   ;;  %s33_s23 = int_to_ptr.hbm [resolvable:$true] %s32_s23 }
   0x4   :  { %s34_s25 = sshll.u32 %s632_s24, 4  ;;  %s19_s28 = sshll.u32 %s697_s0, 4  ;;  %s35_s25 = int_to_ptr.vmem [resolvable:$true] %s34_s25  ;;  %s20_s28 = int_to_ptr.hbm [resolvable:$true] %s19_s28 }
   0x5   :  { %s633_s29 = smov 64   ;;  %s634_s30 = smov 4  }
   0x6   :  { %40 = dma.hbm_to_vmem [thread:$0]  %s33_s23, 1024, %s35_s25, [#allocation6], %s633_s29, %s633_s29, %s634_s30  }
   0x7   :  { %s635_s7 = smov [#allocation2]   ;;  %s45_s11 = sshll.u32 %s699_s2, 4  ;;  %s46_s11 = int_to_ptr.hbm [resolvable:$true] %s45_s11 }
   0x8   :  { %s21_s8 = sshll.u32 %s635_s7, 4  ;;  %s60_s13 = sshll.u32 %s701_s4, 4  ;;  %s22_s8 = int_to_ptr.vmem [resolvable:$true] %s21_s8  ;;  %s61_s13 = int_to_ptr.hbm [resolvable:$true] %s60_s13 }
   0x9   :  { %27 = dma.hbm_to_vmem [thread:$0]  %s20_s28, 128, %s22_s8, [#allocation3], %s633_s29, %s633_s29, %s634_s30  }
   0xa   :  { %s636_s14 = smov [#allocation7]   ;;  %s637_s0 = smov [#allocation8]  }
   0xb   :  { %s47_s15 = sshll.u32 %s636_s14, 4  ;;  %s62_s16 = sshll.u32 %s637_s0, 4  ;;  %s48_s15 = int_to_ptr.vmem [resolvable:$true] %s47_s15  ;;  %s63_s16 = int_to_ptr.vmem [resolvable:$true] %s62_s16 }
   0xc   :  { %53 = dma.hbm_to_vmem [thread:$0]  %s46_s11, 1024, %s48_s15, [#allocation6], %s633_s29, %s633_s29, %s634_s30  }
   0xd   :  { %68 = dma.hbm_to_vmem [thread:$0]  %s61_s13, 1024, %s63_s16, [#allocation9], %s633_s29, %s633_s29, %s634_s30  }
   0xe   :  { %624 = dma.done.wait [#allocation3], 128  }
   0xf   :  { %625 = vsyncadd [#allocation3], 4294967168 }
  0x10   :  { %626 = dma.done.wait [#allocation6], 2048  }
  0x11   :  { %627 = vsyncadd [#allocation6], 4294965248 }
  0x12   :  { %628 = dma.done.wait [#allocation9], 1024  }
  0x13   :  { %629 = vsyncadd [#allocation9], 4294966272  ;;  %v476_v0 = vld [vmem:[#allocation5 + $0x38] sm:$0xff]  ;;  %v475_v1 = vld [vmem:[#allocation5 + $0x30] sm:$0xff]  ;;  %s638_s19 = smov [#allocation10]   ;;  %s639_s23 = smov 128  }
  0x14   :  { %159 = vmatpush.bf16.msra.mxu0 %v476_v0  ;;  %v484_v2 = vld [vmem:[#allocation7 + $0x38] sm:$0xff]  ;;  %v483_v3 = vld [vmem:[#allocation7 + $0x30] sm:$0xff]  ;;  %v474_v4 = vld [vmem:[#allocation5 + $0x28] sm:$0xff]  ;;  %s351_s20 = sshll.u32 %s638_s19, 4  ;;  %s640_s24 = smov 8   ;;  %s352_s20 = int_to_ptr.vmem [resolvable:$true] %s351_s20 }
  0x15   :  { %242 = vmatpush.bf16.msra.mxu1 %v484_v2  ;;  %v482_v5 = vld [vmem:[#allocation7 + $0x28] sm:$0xff]  ;;  %v473_v6 = vld [vmem:[#allocation5 + $0x20] sm:$0xff]  ;;  %v472_v8 = vld [vmem:[#allocation5 + $0x18] sm:$0xff] }
  0x16   :  { %v481_v7 = vld [vmem:[#allocation7 + $0x20] sm:$0xff]  ;;  %v480_v9 = vld [vmem:[#allocation7 + $0x18] sm:$0xff]  ;;  %v471_v10 = vld [vmem:[#allocation5 + $0x10] sm:$0xff] }
  0x17   :  { %v470_v11 = vld [vmem:[#allocation5 + $0x8] sm:$0xff]  ;;  %v469_v12 = vld [vmem:[#allocation5] sm:$0xff]  ;;  %v468_v13 = vld [vmem:[#allocation2] sm:$0xff] }
  0x18   :  { %160 = vmatpush.bf16.msra.mxu0 %v475_v1  ;;  %v479_v14 = vld [vmem:[#allocation7 + $0x10] sm:$0xff]  ;;  %v478_v15 = vld [vmem:[#allocation7 + $0x8] sm:$0xff]  ;;  %v477_v16 = vld [vmem:[#allocation7] sm:$0xff] }
  0x19   :  { %243 = vmatpush.bf16.msra.mxu1 %v483_v3  ;;  %v492_v17 = vld [vmem:[#allocation8 + $0x38] sm:$0xff]  ;;  %v491_v18 = vld [vmem:[#allocation8 + $0x30] sm:$0xff]  ;;  %v490_v19 = vld [vmem:[#allocation8 + $0x28] sm:$0xff] }
  0x1a   :  { %323 = vmatpush.bf16.msra.mxu2 %v492_v17  ;;  %v489_v20 = vld [vmem:[#allocation8 + $0x20] sm:$0xff]  ;;  %v488_v24 = vld [vmem:[#allocation8 + $0x18] sm:$0xff]  ;;  %v487_v25 = vld [vmem:[#allocation8 + $0x10] sm:$0xff] }
  0x1b   :  { %v486_v26 = vld [vmem:[#allocation8 + $0x8] sm:$0xff]  ;;  %v485_v27 = vld [vmem:[#allocation8] sm:$0xff]  ;;  %v502_v29 = vld [vmem:[%s700_s3] ss:$0 sm:$0xff]  ;;  %s353_s3 = sshll.u32 %s703_s6, 4  ;;  %s354_s3 = int_to_ptr.hbm [resolvable:$true] %s353_s3 }
  0x1c   :  { %161 = vmatpush.bf16.msra.mxu0 %v474_v4  ;;  %v503_v36 = vld [vmem:[%s702_s5] ss:$0 sm:$0xff] }
  0x1d   :  { %244 = vmatpush.bf16.msra.mxu1 %v482_v5 }
  0x1e   :  { %324 = vmatpush.bf16.msra.mxu2 %v491_v18 }
  0x20   :  { %162 = vmatpush.bf16.msra.mxu0 %v473_v6 }
  0x21   :  { %245 = vmatpush.bf16.msra.mxu1 %v481_v7 }
  0x22   :  { %325 = vmatpush.bf16.msra.mxu2 %v490_v19 }
  0x24   :  { %163 = vmatpush.bf16.msra.mxu0 %v472_v8 }
  0x25   :  { %246 = vmatpush.bf16.msra.mxu1 %v480_v9 }
  0x26   :  { %326 = vmatpush.bf16.msra.mxu2 %v489_v20 }
  0x28   :  { %164 = vmatpush.bf16.msra.mxu0 %v471_v10 }
  0x29   :  { %247 = vmatpush.bf16.msra.mxu1 %v479_v14 }
  0x2a   :  { %327 = vmatpush.bf16.msra.mxu2 %v488_v24 }
  0x2c   :  { %165 = vmatpush.bf16.msra.mxu0 %v470_v11 }
  0x2d   :  { %248 = vmatpush.bf16.msra.mxu1 %v478_v15 }
  0x2e   :  { %328 = vmatpush.bf16.msra.mxu2 %v487_v25 }
  0x30   :  { %166 = vmatpush.bf16.msra.mxu0 %v469_v12 }
  0x31   :  { %249 = vmatpush.bf16.msra.mxu1 %v477_v16 }
  0x32   :  { %329 = vmatpush.bf16.msra.mxu2 %v486_v26 }
  0x33   :  { %167 = vmatmul.bf16.vlgmr.msra.gmra.mxu0 %v468_v13 }
  0x36   :  { %330 = vmatpush.bf16.msra.mxu2 %v485_v27 }
  0xb0   :  { %v168_v21 = vpop.f32.mrf.mxu0 }
  0xb8   :  { %v170_v22 = vpop.f32.mrf.mxu0 }
  0xb9   :  { %v173_v23 = vpack.c.bf16 %v170_v22, %v168_v21 }
  0xbb   :  { %250 = vmatmul.bf16.vlgmr.msra.gmra.mxu1 %v173_v23 }
 0x138   :  { %v251_v28 = vpop.f32.mrf.mxu1 }
 0x139   :  { %v252_v30 = vadd.f32 %v502_v29, %v251_v28 }
 0x13b   :  { %v256_v33 = vmax.f32 %v252_v30, 0.0 }
 0x140   :  { %v253_v31 = vpop.f32.mrf.mxu1 }
 0x141   :  { %v254_v32 = vadd.f32 %v502_v29, %v253_v31 }
 0x143   :  { %v257_v34 = vmax.f32 %v254_v32, 0.0 }
 0x145   :  { %v258_v35 = vpack.c.bf16 %v257_v34, %v256_v33 }
 0x147   :  { %331 = vmatmul.bf16.vlgmr.msra.gmra.mxu2 %v258_v35 }
 0x1ca   :  { %v332_v37 = vpop.f32.mrf.mxu2 }
 0x1cb   :  { %v337_v38 = vmul.f32 0.33333334, %v332_v37 }
 0x1cd   :  { %v343_v39 = vadd.f32 %v503_v36, %v337_v38 }
 0x1cf   :  { %345 = vst [vmem:[#allocation10] sm:$0xff] %v343_v39 }
 0x1d2   :  { %v334_v40 = vpop.f32.mrf.mxu2 }
 0x1d3   :  { %v338_v41 = vmul.f32 0.33333334, %v334_v40 }
 0x1d5   :  { %v344_v42 = vadd.f32 %v503_v36, %v338_v41 }
 0x1d7   :  { %346 = vst [vmem:[#allocation10 + $0x8] sm:$0xff] %v344_v42 }
 0x1d8   :  { %359 = dma.vmem_to_hbm [thread:$0]  %s352_s20, 256, %s354_s3, [#allocation4], %s639_s23, %s639_s23, %s640_s24  }
 0x1d9   :  { %630 = dma.done.wait [#allocation4], 256  }
 0x1da   :  { %631 = vsyncadd [#allocation4], 4294967040 }
 0x1db   :  { %364 = vsyncpa [#allocation3], 1 }
 0x1dc   :  { %365 = vsyncpa [#allocation6], 1 }
 0x1dd   :  { %366 = vsyncpa [#allocation9], 1 }
 0x1de   :  { %367 = vsyncpa [#allocation4], 1 }

</bundles_post_ra>
